<compile_context>
chip_gen: v7x
topology: tpu7x:2x2x1
jax: 0.10.0
libtpu: 0.0.40
codegen_flags: <defaults>
</compile_context>

<pallas_src>
import functools

import jax
import jax.numpy as jnp
from jax import lax
from jax.experimental import pallas as pl
from jax.experimental.pallas import tpu as pltpu


def _round_up(x, m):
    return (x + m - 1) // m * m


def _fused_resblock_kernel(x_ref, w_ref, b_ref, o_ref, padbuf,
                           *, k, dilations, valid_len):
    """All (LeakyReLU(0.1) -> dilated Conv1d 'same') layers fused; one batch element per step.

    x_ref  : (1, C_p, L_p)             activation, zero-padded beyond the valid C / L
    w_ref  : (n_layers, C_p, k*C_p)    weights flattened so each layer is ONE MXU matmul
    b_ref  : (n_layers, C_p, 1)        biases
    o_ref  : (1, C_p, L_p)             output (lane-dense: L_p is a multiple of 128)
    padbuf : (C_p, L_halo)             VMEM scratch used for the per-layer 'same' halo
    """
    c_p, l_p = o_ref.shape[1], o_ref.shape[2]
    act = x_ref[0].astype(jnp.float32)                     # (C_p, L_p), resident across layers

    # Lane mask over the valid length; re-applied after every conv so the "zero beyond
    # valid_len" invariant holds across layers (bias/halo leakage would otherwise bleed
    # back into valid positions through the next layer's receptive field).
    need_mask = valid_len < l_p
    if need_mask:
        lane_idx = lax.broadcasted_iota(jnp.int32, (c_p, l_p), 1)
        valid = lane_idx < valid_len

    for i, dil in enumerate(dilations):                    # static unroll over layers
        total = dil * (k - 1)
        pad_l = total // 2                                 # PyTorch padding='same' split
        # LeakyReLU(0.1); leaky(0)=0, so padded zeros stay zero.
        a = jnp.where(act > 0, act, 0.1 * act)
        # In-kernel 'same' padding: zero the halo buffer, write activation at offset pad_l.
        padbuf[...] = jnp.zeros_like(padbuf)
        padbuf[:, pad_l:pad_l + l_p] = a
        # Stack the k dilated taps into one (k*C_p, L_p) slab -> single deep MXU matmul.
        slab = jnp.concatenate(
            [padbuf[:, t * dil: t * dil + l_p] for t in range(k)], axis=0)
        out = jnp.dot(w_ref[i], slab, preferred_element_type=jnp.float32)
        out = out + b_ref[i]                               # (C_p, 1) broadcasts over lanes
        act = jnp.where(valid, out, 0.0) if need_mask else out

    o_ref[0] = act.astype(o_ref.dtype)


def res_block_conv(x, weights, biases, k_n, dilations):
    """Fused Pallas implementation of ResBlockConv.forward. x: (N, C, L) float32."""
    N, C, L = x.shape
    n_layers = len(dilations)
    C_p = max(8, _round_up(C, 8))          # full sublanes
    L_p = max(128, _round_up(L, 128))      # lane-dense output stores
    max_total = max(d * (k_n - 1) for d in dilations)
    L_halo = _round_up(L_p + max_total, 128)

    # One-time alignment pad of the activation (zeros in the extra channels / length).
    xp = jnp.pad(x, ((0, 0), (0, C_p - C), (0, L_p - L)))

    # Stack all layer weights/biases once so they are DMA'd to VMEM a single time.
    # PyTorch Conv1d weight is (C_out, C_in, K) -> (C_p, K*C_p) with tap-major columns.
    w_stack = jnp.stack([
        jnp.pad(jnp.transpose(w, (0, 2, 1)),               # (C_out, K, C_in)
                ((0, C_p - C), (0, 0), (0, C_p - C))).reshape(C_p, k_n * C_p)
        for w in weights])                                  # (n_layers, C_p, K*C_p)
    b_stack = jnp.stack([jnp.pad(b, (0, C_p - C))[:, None] for b in biases])  # (n_layers, C_p, 1)

    kernel = functools.partial(
        _fused_resblock_kernel, k=k_n, dilations=tuple(dilations), valid_len=L)

    # TODO(synk): for production audio lengths, tile L on a second ("parallel") grid axis
    # with a halo of sum_i d_i*(k-1) so the fused block fits v7x's 64 MiB VMEM.
    out = pl.pallas_call(
        kernel,
        out_shape=jax.ShapeDtypeStruct((N, C_p, L_p), x.dtype),
        grid_spec=pltpu.PrefetchScalarGridSpec(
            num_scalar_prefetch=0,
            grid=(N,),
            in_specs=[
                pl.BlockSpec((1, C_p, L_p), lambda bi: (bi, 0, 0)),
                pl.BlockSpec((n_layers, C_p, k_n * C_p), lambda bi: (0, 0, 0)),
                pl.BlockSpec((n_layers, C_p, 1), lambda bi: (0, 0, 0)),
            ],
            out_specs=pl.BlockSpec((1, C_p, L_p), lambda bi: (bi, 0, 0)),
            scratch_shapes=[pltpu.VMEM((C_p, L_halo), jnp.float32)]),
        compiler_params=pltpu.CompilerParams(
            dimension_semantics=("parallel",),
            vmem_limit_bytes=48 << 20),
    )(xp, w_stack, b_stack)
    return out[:, :C, :L]


def ref_forward(x, weights, biases, k_n, dilations):
    """Pure-JAX reference mirroring the PyTorch module (LeakyReLU -> dilated 'same' conv)."""
    for w, b, d in zip(weights, biases, dilations):
        x = jnp.where(x > 0, x, 0.1 * x)
        total = d * (k_n - 1)
        pad_l = total // 2
        pad_r = total - pad_l
        x = jax.lax.conv_general_dilated(
            x, w, window_strides=(1,), padding=[(pad_l, pad_r)],
            rhs_dilation=(d,), dimension_numbers=("NCH", "OIH", "NCH"),
        ) + b[None, :, None]
    return x


if __name__ == "__main__":
    # Module hyper-parameters (small, consistent with the PyTorch module signature).
    channels = 4
    k_n = 3
    D_r_n_m = (1, 3, 5)
    batch, length = 2, 16

    key = jax.random.PRNGKey(0)
    key, xkey = jax.random.split(key)
    x = jax.random.normal(xkey, (batch, channels, length), dtype=jnp.float32)

    # Deterministic parameter init (same shapes as nn.Conv1d(channels, channels, k_n)).
    weights, biases = [], []
    for _ in D_r_n_m:
        key, wkey, bkey = jax.random.split(key, 3)
        weights.append(
            jax.random.normal(wkey, (channels, channels, k_n), dtype=jnp.float32) * 0.1)
        biases.append(
            jax.random.normal(bkey, (channels,), dtype=jnp.float32) * 0.1)

    out = res_block_conv(x, weights, biases, k_n, D_r_n_m)
    out = jax.block_until_ready(out)

    ref = jax.block_until_ready(ref_forward(x, weights, biases, k_n, D_r_n_m))
    assert out.shape == (batch, channels, length)
    assert jnp.allclose(out, ref, atol=1e-4, rtol=1e-4)

    print("KERNEL_OK")
</pallas_src>

<mosaic_0001>
module attributes {stable_mosaic.version = 11 : i64} {
  func.func @_fused_resblock_kernel(%arg0: i32, %arg1: memref<1x8x128xf32, #tpu.memory_space<vmem>>, %arg2: memref<3x8x24xf32, #tpu.memory_space<vmem>>, %arg3: memref<3x8x1xf32, #tpu.memory_space<vmem>>, %arg4: memref<1x8x128xf32, #tpu.memory_space<vmem>>, %arg5: memref<8x256xf32, #tpu.memory_space<vmem>>) attributes {dimension_semantics = [#tpu.dimension_semantics<parallel>], iteration_bounds = array<i64: 2>, scalar_prefetch = 0 : i64, scratch_operands = 1 : i64, tpu.core_type = #tpu.core_type<tc>, window_params = [{transform_indices = @transform_0, window_bounds = array<i64: 1, 8, 128>}, {pipeline_mode = #tpu.pipeline_mode<synchronous>, transform_indices = @transform_1, window_bounds = array<i64: 3, 8, 24>}, {pipeline_mode = #tpu.pipeline_mode<synchronous>, transform_indices = @transform_2, window_bounds = array<i64: 3, 8, 1>}, {transform_indices = @transform_3, window_bounds = array<i64: 1, 8, 128>}]} {
    %c0 = arith.constant 0 : index
    %c0_0 = arith.constant 0 : index
    %c0_1 = arith.constant 0 : index
    %0 = vector.load %arg1[%c0, %c0_0, %c0_1] : memref<1x8x128xf32, #tpu.memory_space<vmem>>, vector<1x8x128xf32>
    %1 = vector.shape_cast %0 : vector<1x8x128xf32> to vector<8x128xf32>
    %2 = tpu.iota {dimensions = array<i32: 1>} : vector<8x128xi32>
    %c16_i32 = arith.constant 16 : i32
    %3 = vector.broadcast %c16_i32 : i32 to vector<8x128xi32>
    %4 = arith.cmpi slt, %2, %3 : vector<8x128xi32>
    %cst = arith.constant 0.000000e+00 : f32
    %5 = vector.broadcast %cst : f32 to vector<8x128xf32>
    %6 = arith.cmpf ogt, %1, %5 : vector<8x128xf32>
    %cst_2 = arith.constant 1.000000e-01 : f32
    %7 = vector.broadcast %cst_2 : f32 to vector<8x128xf32>
    %8 = arith.mulf %7, %1 : vector<8x128xf32>
    %9 = arith.select %6, %1, %8 : vector<8x128xi1>, vector<8x128xf32>
    %cst_3 = arith.constant 0.000000e+00 : f32
    %10 = vector.broadcast %cst_3 : f32 to vector<8x256xf32>
    %c0_4 = arith.constant 0 : index
    %c0_5 = arith.constant 0 : index
    %11 = vector.load %arg5[%c0_4, %c0_5] : memref<8x256xf32, #tpu.memory_space<vmem>>, vector<8x256xf32>
    tpu.vector_store %arg5[%c0_4, %c0_5], %10 {strides = array<i32>} : memref<8x256xf32, #tpu.memory_space<vmem>>, vector<8x256xf32>,
    %c0_6 = arith.constant 0 : index
    %c1 = arith.constant 1 : index
    %12 = vector.load %arg5[%c0_6, %c1] : memref<8x256xf32, #tpu.memory_space<vmem>>, vector<8x128xf32>
    tpu.vector_store %arg5[%c0_6, %c1], %9 {strides = array<i32>} : memref<8x256xf32, #tpu.memory_space<vmem>>, vector<8x128xf32>,
    %c0_7 = arith.constant 0 : index
    %c0_8 = arith.constant 0 : index
    %13 = vector.load %arg5[%c0_7, %c0_8] : memref<8x256xf32, #tpu.memory_space<vmem>>, vector<8x128xf32>
    %c0_9 = arith.constant 0 : index
    %c1_10 = arith.constant 1 : index
    %14 = vector.load %arg5[%c0_9, %c1_10] : memref<8x256xf32, #tpu.memory_space<vmem>>, vector<8x128xf32>
    %c0_11 = arith.constant 0 : index
    %c2 = arith.constant 2 : index
    %15 = vector.load %arg5[%c0_11, %c2] : memref<8x256xf32, #tpu.memory_space<vmem>>, vector<8x128xf32>
    %16 = tpu.concatenate %13, %14, %15 in 0 : vector<8x128xf32>, vector<8x128xf32>, vector<8x128xf32> -> vector<24x128xf32>
    %c0_12 = arith.constant 0 : index
    %c0_13 = arith.constant 0 : index
    %c0_14 = arith.constant 0 : index
    %17 = vector.load %arg2[%c0_12, %c0_13, %c0_14] : memref<3x8x24xf32, #tpu.memory_space<vmem>>, vector<1x8x24xf32>
    %18 = vector.shape_cast %17 : vector<1x8x24xf32> to vector<8x24xf32>
    %cst_15 = arith.constant dense<0.000000e+00> : vector<8x128xf32>
    %19 = tpu.matmul %18, %16, %cst_15 {dimension_numbers = #tpu.dot_dimension_numbers<[1], [0], [0], [1], [0, 0, 1, 1], [], []>} : vector<8x24xf32>, vector<24x128xf32>, vector<8x128xf32> -> vector<8x128xf32>
    %c0_16 = arith.constant 0 : index
    %c0_17 = arith.constant 0 : index
    %c0_18 = arith.constant 0 : index
    %20 = vector.load %arg3[%c0_16, %c0_17, %c0_18] : memref<3x8x1xf32, #tpu.memory_space<vmem>>, vector<1x8x1xf32>
    %21 = vector.shape_cast %20 : vector<1x8x1xf32> to vector<8x1xf32>
    %22 = vector.broadcast %21 : vector<8x1xf32> to vector<8x128xf32>
    %23 = arith.addf %19, %22 : vector<8x128xf32>
    %cst_19 = arith.constant 0.000000e+00 : f32
    %24 = vector.broadcast %cst_19 : f32 to vector<8x128xf32>
    %25 = arith.select %4, %23, %24 : vector<8x128xi1>, vector<8x128xf32>
    %cst_20 = arith.constant 0.000000e+00 : f32
    %26 = vector.broadcast %cst_20 : f32 to vector<8x128xf32>
    %27 = arith.cmpf ogt, %25, %26 : vector<8x128xf32>
    %cst_21 = arith.constant 1.000000e-01 : f32
    %28 = vector.broadcast %cst_21 : f32 to vector<8x128xf32>
    %29 = arith.mulf %28, %25 : vector<8x128xf32>
    %30 = arith.select %27, %25, %29 : vector<8x128xi1>, vector<8x128xf32>
    %cst_22 = arith.constant 0.000000e+00 : f32
    %31 = vector.broadcast %cst_22 : f32 to vector<8x256xf32>
    %c0_23 = arith.constant 0 : index
    %c0_24 = arith.constant 0 : index
    %32 = vector.load %arg5[%c0_23, %c0_24] : memref<8x256xf32, #tpu.memory_space<vmem>>, vector<8x256xf32>
    tpu.vector_store %arg5[%c0_23, %c0_24], %31 {strides = array<i32>} : memref<8x256xf32, #tpu.memory_space<vmem>>, vector<8x256xf32>,
    %c0_25 = arith.constant 0 : index
    %c3 = arith.constant 3 : index
    %33 = vector.load %arg5[%c0_25, %c3] : memref<8x256xf32, #tpu.memory_space<vmem>>, vector<8x128xf32>
    tpu.vector_store %arg5[%c0_25, %c3], %30 {strides = array<i32>} : memref<8x256xf32, #tpu.memory_space<vmem>>, vector<8x128xf32>,
    %c0_26 = arith.constant 0 : index
    %c0_27 = arith.constant 0 : index
    %34 = vector.load %arg5[%c0_26, %c0_27] : memref<8x256xf32, #tpu.memory_space<vmem>>, vector<8x128xf32>
    %c0_28 = arith.constant 0 : index
    %c3_29 = arith.constant 3 : index
    %35 = vector.load %arg5[%c0_28, %c3_29] : memref<8x256xf32, #tpu.memory_space<vmem>>, vector<8x128xf32>
    %c0_30 = arith.constant 0 : index
    %c6 = arith.constant 6 : index
    %36 = vector.load %arg5[%c0_30, %c6] : memref<8x256xf32, #tpu.memory_space<vmem>>, vector<8x128xf32>
    %37 = tpu.concatenate %34, %35, %36 in 0 : vector<8x128xf32>, vector<8x128xf32>, vector<8x128xf32> -> vector<24x128xf32>
    %c1_31 = arith.constant 1 : index
    %c0_32 = arith.constant 0 : index
    %c0_33 = arith.constant 0 : index
    %38 = vector.load %arg2[%c1_31, %c0_32, %c0_33] : memref<3x8x24xf32, #tpu.memory_space<vmem>>, vector<1x8x24xf32>
    %39 = vector.shape_cast %38 : vector<1x8x24xf32> to vector<8x24xf32>
    %cst_34 = arith.constant dense<0.000000e+00> : vector<8x128xf32>
    %40 = tpu.matmul %39, %37, %cst_34 {dimension_numbers = #tpu.dot_dimension_numbers<[1], [0], [0], [1], [0, 0, 1, 1], [], []>} : vector<8x24xf32>, vector<24x128xf32>, vector<8x128xf32> -> vector<8x128xf32>
    %c1_35 = arith.constant 1 : index
    %c0_36 = arith.constant 0 : index
    %c0_37 = arith.constant 0 : index
    %41 = vector.load %arg3[%c1_35, %c0_36, %c0_37] : memref<3x8x1xf32, #tpu.memory_space<vmem>>, vector<1x8x1xf32>
    %42 = vector.shape_cast %41 : vector<1x8x1xf32> to vector<8x1xf32>
    %43 = vector.broadcast %42 : vector<8x1xf32> to vector<8x128xf32>
    %44 = arith.addf %40, %43 : vector<8x128xf32>
    %cst_38 = arith.constant 0.000000e+00 : f32
    %45 = vector.broadcast %cst_38 : f32 to vector<8x128xf32>
    %46 = arith.select %4, %44, %45 : vector<8x128xi1>, vector<8x128xf32>
    %cst_39 = arith.constant 0.000000e+00 : f32
    %47 = vector.broadcast %cst_39 : f32 to vector<8x128xf32>
    %48 = arith.cmpf ogt, %46, %47 : vector<8x128xf32>
    %cst_40 = arith.constant 1.000000e-01 : f32
    %49 = vector.broadcast %cst_40 : f32 to vector<8x128xf32>
    %50 = arith.mulf %49, %46 : vector<8x128xf32>
    %51 = arith.select %48, %46, %50 : vector<8x128xi1>, vector<8x128xf32>
    %cst_41 = arith.constant 0.000000e+00 : f32
    %52 = vector.broadcast %cst_41 : f32 to vector<8x256xf32>
    %c0_42 = arith.constant 0 : index
    %c0_43 = arith.constant 0 : index
    %53 = vector.load %arg5[%c0_42, %c0_43] : memref<8x256xf32, #tpu.memory_space<vmem>>, vector<8x256xf32>
    tpu.vector_store %arg5[%c0_42, %c0_43], %52 {strides = array<i32>} : memref<8x256xf32, #tpu.memory_space<vmem>>, vector<8x256xf32>,
    %c0_44 = arith.constant 0 : index
    %c5 = arith.constant 5 : index
    %54 = vector.load %arg5[%c0_44, %c5] : memref<8x256xf32, #tpu.memory_space<vmem>>, vector<8x128xf32>
    tpu.vector_store %arg5[%c0_44, %c5], %51 {strides = array<i32>} : memref<8x256xf32, #tpu.memory_space<vmem>>, vector<8x128xf32>,
    %c0_45 = arith.constant 0 : index
    %c0_46 = arith.constant 0 : index
    %55 = vector.load %arg5[%c0_45, %c0_46] : memref<8x256xf32, #tpu.memory_space<vmem>>, vector<8x128xf32>
    %c0_47 = arith.constant 0 : index
    %c5_48 = arith.constant 5 : index
    %56 = vector.load %arg5[%c0_47, %c5_48] : memref<8x256xf32, #tpu.memory_space<vmem>>, vector<8x128xf32>
    %c0_49 = arith.constant 0 : index
    %c10 = arith.constant 10 : index
    %57 = vector.load %arg5[%c0_49, %c10] : memref<8x256xf32, #tpu.memory_space<vmem>>, vector<8x128xf32>
    %58 = tpu.concatenate %55, %56, %57 in 0 : vector<8x128xf32>, vector<8x128xf32>, vector<8x128xf32> -> vector<24x128xf32>
    %c2_50 = arith.constant 2 : index
    %c0_51 = arith.constant 0 : index
    %c0_52 = arith.constant 0 : index
    %59 = vector.load %arg2[%c2_50, %c0_51, %c0_52] : memref<3x8x24xf32, #tpu.memory_space<vmem>>, vector<1x8x24xf32>
    %60 = vector.shape_cast %59 : vector<1x8x24xf32> to vector<8x24xf32>
    %cst_53 = arith.constant dense<0.000000e+00> : vector<8x128xf32>
    %61 = tpu.matmul %60, %58, %cst_53 {dimension_numbers = #tpu.dot_dimension_numbers<[1], [0], [0], [1], [0, 0, 1, 1], [], []>} : vector<8x24xf32>, vector<24x128xf32>, vector<8x128xf32> -> vector<8x128xf32>
    %c2_54 = arith.constant 2 : index
    %c0_55 = arith.constant 0 : index
    %c0_56 = arith.constant 0 : index
    %62 = vector.load %arg3[%c2_54, %c0_55, %c0_56] : memref<3x8x1xf32, #tpu.memory_space<vmem>>, vector<1x8x1xf32>
    %63 = vector.shape_cast %62 : vector<1x8x1xf32> to vector<8x1xf32>
    %64 = vector.broadcast %63 : vector<8x1xf32> to vector<8x128xf32>
    %65 = arith.addf %61, %64 : vector<8x128xf32>
    %cst_57 = arith.constant 0.000000e+00 : f32
    %66 = vector.broadcast %cst_57 : f32 to vector<8x128xf32>
    %67 = arith.select %4, %65, %66 : vector<8x128xi1>, vector<8x128xf32>
    %c0_58 = arith.constant 0 : index
    %c0_59 = arith.constant 0 : index
    %c0_60 = arith.constant 0 : index
    %68 = vector.load %arg4[%c0_58, %c0_59, %c0_60] : memref<1x8x128xf32, #tpu.memory_space<vmem>>, vector<1x8x128xf32>
    %69 = vector.shape_cast %68 : vector<1x8x128xf32> to vector<8x128xf32>
    %70 = vector.shape_cast %67 : vector<8x128xf32> to vector<1x8x128xf32>
    tpu.vector_store %arg4[%c0_58, %c0_59, %c0_60], %70 {strides = array<i32>} : memref<1x8x128xf32, #tpu.memory_space<vmem>>, vector<1x8x128xf32>,
    return
  }
  func.func @transform_0(%arg0: i32) -> (i32, i32, i32) {
    %c0_i32 = arith.constant 0 : i32
    %c0_i32_0 = arith.constant 0 : i32
    %c0_i32_1 = arith.constant 0 : i32
    return %arg0, %c0_i32, %c0_i32_0 : i32, i32, i32
  }
  func.func @transform_1(%arg0: i32) -> (i32, i32, i32) {
    %c0_i32 = arith.constant 0 : i32
    %c0_i32_0 = arith.constant 0 : i32
    %c0_i32_1 = arith.constant 0 : i32
    %c0_i32_2 = arith.constant 0 : i32
    return %c0_i32, %c0_i32_0, %c0_i32_1 : i32, i32, i32
  }
  func.func @transform_2(%arg0: i32) -> (i32, i32, i32) {
    %c0_i32 = arith.constant 0 : i32
    %c0_i32_0 = arith.constant 0 : i32
    %c0_i32_1 = arith.constant 0 : i32
    %c0_i32_2 = arith.constant 0 : i32
    return %c0_i32, %c0_i32_0, %c0_i32_1 : i32, i32, i32
  }
  func.func @transform_3(%arg0: i32) -> (i32, i32, i32) {
    %c0_i32 = arith.constant 0 : i32
    %c0_i32_0 = arith.constant 0 : i32
    %c0_i32_1 = arith.constant 0 : i32
    return %arg0, %c0_i32, %c0_i32_0 : i32, i32, i32
  }
}

</mosaic_0001>

<bundles_post_ra>
// kernel: tpu_custom_call.1
= control target key start
LH: loop header
LB: loop body
LE: loop exit
PB: predicated region body
PF: predicated region fallthrough
CT: control target
= control target key end

     0   :  { %8 = vsyncpa [#allocation4], 0  ;;  %s1105_s0 = inlined_call_operand.hbm [shape: f32[2,8,128], index: 0, kind: input, shape index: {}]   ;;  %s1106_s1 = inlined_call_operand.vmem [shape: f32[3,8,24], index: 1, kind: input, shape index: {}]   ;;  %s1107_s2 = inlined_call_operand.vmem [shape: f32[3,8,1], index: 2, kind: input, shape index: {}]   ;;  %s1108_s3 = inlined_call_operand.hbm [shape: f32[2,8,128], index: 3, kind: output, shape index: {}]  }
   0x1   :  { %10 = vsyncpa [#allocation4 + $0x1], 0 }
   0x2   :  { %11 = vsyncpa [#allocation5], 0 }
   0x3   :  { %13 = vsyncpa [#allocation5 + $0x1], 0  ;;  %s895_s12 = smov 0   ;;  %s897_s13 = smov 0  }
   0x4   :  { %s899_s14 = smov 0   ;;  %s901_s15 = smov 0  }
   0x5 LB: > { %s916_s16 = sadd.s32 4294967295, %s858_s15   ;;  %s619_s17 = sadd.s32 4294967294, %s858_s15   ;;  %s858_s15 = sphi %s901_s15, %s1123_s15   ;;  %s854_s14 = sphi %s899_s14, %s1122_s14   ;;  %s850_s13 = sphi %s897_s13, %s1121_s13   ;;  %s846_s12 = sphi %s895_s12, %s1120_s12  }
   0x6   : > { %s920_s18 = sadd.s32 1, %s858_s15   ;;  %s26_s19 = sadd.s32 1, %s854_s14 }
   0x7   : > { %s23_s20 = ssub.s32 %s858_s15, %s920_s18  ;;  %p33_p0 = scmp.ne.s32.totalorder %s854_s14, %s850_s13 }
   0x8   : > { %p24_p1 = scmp.eq.s32.totalorder %s23_s20, 0  ;;  %p34_p2 = scmp.eq.s32.totalorder %s858_s15, 0 }
   0x9   : > { %p39_p3 = scmp.ne.s32.totalorder %s850_s13, %s846_s12  ;;  %p40_p4 = scmp.eq.s32.totalorder %s916_s16, 0 }
   0xa   : > { %s932_s21 = scalar_select %p24_p1, %s854_s14, %s26_s19  }
   0xb   : > { %p934_p5 = por %p34_p2, %p33_p0  ;;  %p938_p6 = por %p40_p4, %p39_p3 }
   0xc   : > { %p105_p7 = scmp.eq.s32.totalorder %s916_s16, 1  ;;  %p111_p8 = scmp.eq.s32.totalorder %s619_s17, 1 }
   0xd   : > { %p698_p10 = scmp.lt.s32.totalorder %s858_s15, 2  ;;  %s137_s26 = sand.u32 1, %s854_s14  }
   0xe   : > { %p945_p11 = por %p105_p7, %p33_p0  ;;  %p949_p12 = por %p111_p8, %p39_p3 }
   0xf   : > { %s623_s27 = sshll.u32 %s858_s15, 7  ;;  %s622_s28 = sshll.u32 %s137_s26, 3 }
  0x10   : > { %s1112_s24 = scalar_select %p945_p11, 1, 0 }
  0x11   : > { %s1113_s25 = scalar_select %p949_p12, 1, 0 }
  0x12   : > { %s958_s4 = scalar_lea.hbm %s1105_s0, %s623_s27  ;;  %s141_s5 = scalar_lea.vmem [#allocation3], %s622_s28 }
  0x13   : > { %s148_s6 = sshll.u32 %s141_s5, 4  ;;  %p962_p13 = pnand %p698_p10, %p934_p5  ;;  %s966_s6 = int_to_ptr.vmem [resolvable:$true] %s148_s6 }
  0x14   : > { %s138_s8 = scalar_lea.sflag [#allocation4], %s137_s26  ;;  %s762_s9 = scalar_lea.hbm %s958_s4, 128 }
  0x15   : > { %p763_p2 = scmp.ne.s32.totalorder %s958_s4, %s762_s9  ;;  %p764_p3 = pneg %p962_p13 }
  0x16   : > { %s767_s17 = scalar_lea.hbm %s1105_s0, 256  ;;  %p768_p5 = scmp.lt.u32.totalorder %s958_s4, %s1105_s0 }
  0x17   : > { %p765_p4 = pnand %p764_p3, %p763_p2  ;;  %p769_p8 = scmp.lt.u32.totalorder %s767_s17, %s762_s9 }
  0x18   : > { %p771_p9 = scmp.lt.u32.totalorder %s762_s9, %s958_s4 }
  0x19   : > { %p766_p7 = pneg %p765_p4  ;;  %p770_p10 = por %p769_p8, %p768_p5 }
  0x1b   : > { %p772_p0 = por %p771_p9, %p770_p10 }
  0x1d   : > { %p773_p1 = pnand %p772_p0, %p766_p7 }
  0x1f   : > { %776 = shalt.err (!%p773_p1)
}
  0x20   : > { %s777_s22 = scalar_lea.vmem %s966_s6, 128  ;;  %s860_s26 = smov [#allocation3]  }
  0x21   : > { %p778_p2 = scmp.ne.s32.totalorder %s966_s6, %s777_s22  ;;  %s782_s27 = sshll.u32 %s860_s26, 4  ;;  %s783_s27 = int_to_ptr.vmem [resolvable:$false] %s782_s27 }
  0x22   : > { %s784_s28 = scalar_lea.vmem %s783_s27, 256  ;;  %p785_p11 = scmp.lt.s32.totalorder %s966_s6, %s783_s27 }
  0x23   : > { %p780_p4 = pnand %p778_p2, %p764_p3  ;;  %p786_p5 = scmp.lt.s32.totalorder %s784_s28, %s777_s22 }
  0x25   : > { %p781_p12 = pneg %p780_p4  ;;  %p787_p8 = por %p786_p5, %p785_p11 }
  0x27   : > { %p788_p9 = pnand %p787_p8, %p781_p12 }
  0x29   : > { %791 = shalt.err (!%p788_p9)
}
  0x2a   : > { %693 = dma.hbm_to_vmem [thread:$0]  (!%p962_p13), %s958_s4, 128, %s966_s6, %s138_s8  }
  0x2b   : > { %p1115_p0 = scmp.lt.s32.totalorder %s858_s15, 3  ;;  %p1116_p1 = scmp.ge.s32.totalorder %s858_s15, 1 }
  0x2d   : > { %p154_p3 = pnand %p1116_p1, %p1115_p0 }
  0x2e   : > { %s1000_s29 = sand.u32 (!%p154_p3), 1, %s850_s13  }
  0x2f   : > { %157 = sbr.rel (%p154_p3) target bundleno = 1477 (0x5c5), region = 32  ;;  %s625_s30 = sshll.u32 (!%p154_p3), %s1000_s29, 3 }
  0x30   : > { %s160_s5 = scalar_lea.sflag (!%p154_p3), [#allocation4], %s1000_s29  ;;  %s163_s7 = scalar_lea.vmem (!%p154_p3), [#allocation3], %s625_s30 }
  0x36   : > { %837 = dma.done.wait (%p938_p6), %s160_s5, 128  }
  0x37   : > { %839 = vsyncadd (%p938_p6), %s160_s5, 4294967168  ;;  %v861_v0 = vmov 0.0   ;;  %v186_v1 = vld [vmem:[%s163_s7] sm:$0xff]  ;;  %s862_s4 = smov 1   ;;  %vm199_vm1 = vcmask 1047560   ;;  %vm201_vm2 = vcmask 7168   ;;  %v187_v20 = vlaneseq }
  0x38   : > { %193 = vst [vmem:[#allocation2] sm:$0xff] %v861_v0  ;;  %194 = vst [vmem:[#allocation2 + $0x8] sm:$0xff] %v861_v0  ;;  %vm190_vm0 = vcmp.gt.f32.partialorder %v186_v1, 0.0  ;;  %v191_v2 = vmul.f32 0.1, %v186_v1  ;;  %v863_v5 = vmov 0.0|0.0  }
  0x39   : > { %677 = vmatprep.subr.bf16.mxu0 %v863_v5  ;;  %680 = vmatprep.subr.bf16.mxu1 %v863_v5  ;;  %vm864_vm3 = vmmov 0   ;;  %s865_s23 = smov 126   ;;  %v866_v9 = vmov 0   ;;  %s867_s6 = smov 127   ;;  %v223_v10 = vld [vmem:[%s1107_s2] sm:$0xff]  ;;  %vm212_vm4 = vcmask 1039360  }
  0x3a   : > { %v192_v3 = vsel %vm190_vm0, %v186_v1, %v191_v2  ;;  %656 = vmatprep.mubr.msk.f32.mxu0 %vm864_vm3, %v861_v0  ;;  %665 = vmatprep.mubr.msk.f32.mxu1 %vm864_vm3, %v861_v0  ;;  %vm219_vm5 = vcmask 1031168   ;;  %v222_v18 = vld [vmem:[%s1106_s1] sm:$0xff]  ;;  %vm229_vm6 = vcmask 195584   ;;  %v1028_v21 = vand.u32 127, %v187_v20  ;;  %s868_s17 = smov 3   ;;  %s869_s19 = smov 122  }
  0x3b   : > { %196 = vrot.lane.b32.xlu0 %v192_v3, %s862_s4  ;;  %761 = vset.pattern.permute.xlu1 %v866_v9  ;;  %vm313_vm9 = vcmask 1047576   ;;  %vm315_vm10 = vcmask 23552   ;;  %v629_v33 = vld [vmem:[%s1107_s2 + $0x8] sm:$0xff]  ;;  %s870_s26 = smov 125   ;;  %vm326_vm11 = vcmask 1022976   ;;  %vm333_vm12 = vcmask 998400  }
  0x3c   : > { %750 = vset.pattern.permute.xlu0 %v866_v9  ;;  %vm189_vm7 = vcmp.lt.s32.totalorder %v1028_v21, 16  ;;  %v628_v41 = vld [vmem:[%s1106_s1 + $0x8] sm:$0xff]  ;;  %s871_s5 = smov 5   ;;  %vm428_vm14 = vcmask 1047592   ;;  %vm430_vm15 = vcmask 39936   ;;  %s872_s7 = smov 118  }
  0x3d   : > { %v632_v54 = vld [vmem:[%s1107_s2 + $0x10] sm:$0xff]  ;;  %vm441_vm0 = vcmask 1006592   ;;  %s635_s10 = sshll.u32 %s916_s16, 7  ;;  %s185_s11 = scalar_lea.vmem [#allocation6], %s625_s30 }
  0x3e   : > { %v631_v62 = vld [vmem:[%s1106_s1 + $0x10] sm:$0xff]  ;;  %s1059_s22 = scalar_lea.hbm %s1108_s3, %s635_s10  ;;  %s536_s16 = scalar_lea.sflag [#allocation5], %s1000_s29 }
  0x3f   : > { %p1117_p11 = scmp.ne.s32.totalorder %s1112_s24, 0 }
  0xad   : > { %v197_v4 = vpop.permute.xlu0 %196 }
  0xae   : > { %200 = vst.msk [vmem:[#allocation2] sm:$0xff] %vm199_vm1, %v197_v4  ;;  %vm448_vm1 = vcmask 965632  }
  0xaf   : > { %202 = vst.msk [vmem:[#allocation2 + $0x8] sm:$0xff] %vm201_vm2, %v197_v4 }
  0xb5   : > { %v204_v6 = vld [vmem:[#allocation2] sm:$0xff] }
  0xb6   : > { %v205_v7 = vld [vmem:[#allocation2 + $0x8] sm:$0xff]  ;;  %215 = vrot.lane.b32.xlu1 %v204_v6, %s865_s23  ;;  %307 = vst [vmem:[#allocation2] sm:$0xff] %v861_v0 }
  0xb7   : > { %v745_v8 = vpack.i.bf16 %v205_v7, %v204_v6  ;;  %308 = vst [vmem:[#allocation2 + $0x8] sm:$0xff] %v861_v0 }
  0xb9   : > { %746 = vrot.lane.b32.xlu0 %v745_v8, %s867_s6  ;;  %s873_s6 = smov 123  }
  0xba   : > { %217 = vrot.lane.b32.xlu1 %v205_v7, %s865_s23 }
  0xbd   : > { %226 = vperm.xlu0 %750, %v223_v10  }
 0x128   : > { %v216_v11 = vpop.permute.xlu1 %215 }
 0x12b   : > { %v747_v12 = vpop.permute.xlu0 %746 }
 0x12c   : > { %v749_v13 = vunpack.i.h.bf16 %v747_v12  ;;  %v748_v14 = vunpack.i.l.bf16 %v747_v12  ;;  %v218_v17 = vpop.permute.xlu1 %217 }
 0x12d   : > { %v220_v19 = vsel %vm219_vm5, %v216_v11, %v218_v17 }
 0x12e   : > { %v213_v15 = vsel %vm212_vm4, %v748_v14, %v749_v13 }
 0x12f   : > { %v678_v16 = vpack.c.bf16 %v213_v15, %v204_v6 }
 0x131   : > { %679 = vmatpush3.bf16.msra.mxu0 %v678_v16 }
 0x132   : > { %654 = vmatprep.subr.mxu0 %v861_v0 }
 0x135   : > { %655 = vmatpush3.msra.mxu0 %v220_v19 }
 0x136   : > { %657 = vmatmul.mubr.msk.f32.vlgmr.msra.gmra.mrb[0].mxu0 %vm229_vm6, %v222_v18  ;;  %683 = vmatprep.subr.bf16.mxu0 %v863_v5 }
 0x137   : > { %674 = vmatprep.mubr.msk.f32.mxu0 %vm864_vm3, %v861_v0 }
 0x13c   : > { %v227_v22 = vpop.permute.xlu0 %226 }
 0x209   : > { %v299_v23 = vpop.f32.mrb[0].mxu0 }
 0x20a   : > { %v300_v24 = vadd.f32 %v299_v23, %v227_v22  ;;  %v658_v25 = vpop.f32.mrb[1].mxu0 }
 0x20c   : > { %v303_v26 = vsel %vm189_vm7, %v300_v24, 0.0 }
 0x20d   : > { %v305_v27 = vmul.f32 0.1, %v303_v26  ;;  %vm304_vm8 = vcmp.gt.f32.partialorder %v303_v26, 0.0 }
 0x20f   : > { %v306_v28 = vsel %vm304_vm8, %v303_v26, %v305_v27 }
 0x210   : > { %310 = vrot.lane.b32.xlu1 %v306_v28, %s868_s17  ;;  %s549_s17 = sshll.u32 %s185_s11, 4  ;;  %s1061_s17 = int_to_ptr.vmem [resolvable:$true] %s549_s17 }
 0x211   : > { %s792_s30 = scalar_lea.vmem %s1061_s17, 128 }
 0x212   : > { %p793_p6 = scmp.ne.s32.totalorder %s1061_s17, %s792_s30 }
 0x214   : > { %p794_p12 = pnand %p793_p6, %p1117_p11 }
 0x216   : > { %p795_p13 = pneg %p794_p12 }
 0x282   : > { %v311_v29 = vpop.permute.xlu1 %310 }
 0x283   : > { %314 = vst.msk [vmem:[#allocation2] sm:$0xff] %vm313_vm9, %v311_v29 }
 0x284   : > { %316 = vst.msk [vmem:[#allocation2 + $0x8] sm:$0xff] %vm315_vm10, %v311_v29 }
 0x28a   : > { %v318_v30 = vld [vmem:[#allocation2] sm:$0xff] }
 0x28b   : > { %v319_v31 = vld [vmem:[#allocation2 + $0x8] sm:$0xff]  ;;  %329 = vrot.lane.b32.xlu0 %v318_v30, %s869_s19  ;;  %422 = vst [vmem:[#allocation2] sm:$0xff] %v861_v0 }
 0x28c   : > { %v751_v32 = vpack.i.bf16 %v319_v31, %v318_v30  ;;  %423 = vst [vmem:[#allocation2 + $0x8] sm:$0xff] %v861_v0 }
 0x28e   : > { %752 = vrot.lane.b32.xlu1 %v751_v32, %s870_s26  ;;  %s874_s26 = smov [#allocation6]  }
 0x28f   : > { %342 = vperm.xlu0 %750, %v629_v33   ;;  %s796_s27 = sshll.u32 %s874_s26, 4  ;;  %s797_s27 = int_to_ptr.vmem [resolvable:$false] %s796_s27 }
 0x290   : > { %s798_s28 = scalar_lea.vmem %s797_s27, 256  ;;  %p799_p7 = scmp.lt.s32.totalorder %s1061_s17, %s797_s27 }
 0x291   : > { %p800_p10 = scmp.lt.s32.totalorder %s798_s28, %s792_s30 }
 0x292   : > { %331 = vrot.lane.b32.xlu1 %v319_v31, %s869_s19 }
 0x293   : > { %p801_p2 = por %p800_p10, %p799_p7 }
 0x295   : > { %p802_p4 = pnand %p801_p2, %p795_p13 }
 0x2fd   : > { %v330_v40 = vpop.permute.xlu0 %329 }
 0x300   : > { %v753_v34 = vpop.permute.xlu1 %752 }
 0x301   : > { %v755_v35 = vunpack.i.h.bf16 %v753_v34  ;;  %v754_v36 = vunpack.i.l.bf16 %v753_v34 }
 0x303   : > { %v327_v37 = vsel %vm326_vm11, %v754_v36, %v755_v35 }
 0x304   : > { %v681_v38 = vpack.c.bf16 %v327_v37, %v318_v30  ;;  %v332_v39 = vpop.permute.xlu1 %331 }
 0x305   : > { %v334_v42 = vsel %vm333_vm12, %v330_v40, %v332_v39 }
 0x306   : > { %682 = vmatpush3.bf16.msra.mxu1 %v681_v38 }
 0x307   : > { %663 = vmatprep.subr.mxu1 %v861_v0 }
 0x30a   : > { %664 = vmatpush3.msra.mxu1 %v334_v42 }
 0x30b   : > { %666 = vmatmul.mubr.msk.f32.vlgmr.msra.gmra.mrb[0].mxu1 %vm229_vm6, %v628_v41 }
 0x30e   : > { %v343_v43 = vpop.permute.xlu0 %342 }
 0x3de   : > { %v414_v44 = vpop.f32.mrb[0].mxu1 }
 0x3df   : > { %v415_v45 = vadd.f32 %v414_v44, %v343_v43  ;;  %v667_v46 = vpop.f32.mrb[1].mxu1 }
 0x3e1   : > { %v418_v47 = vsel %vm189_vm7, %v415_v45, 0.0 }
 0x3e2   : > { %v420_v48 = vmul.f32 0.1, %v418_v47  ;;  %vm419_vm13 = vcmp.gt.f32.partialorder %v418_v47, 0.0 }
 0x3e4   : > { %v421_v49 = vsel %vm419_vm13, %v418_v47, %v420_v48 }
 0x3e5   : > { %425 = vrot.lane.b32.xlu1 %v421_v49, %s871_s5 }
 0x457   : > { %v426_v50 = vpop.permute.xlu1 %425 }
 0x458   : > { %429 = vst.msk [vmem:[#allocation2] sm:$0xff] %vm428_vm14, %v426_v50 }
 0x459   : > { %431 = vst.msk [vmem:[#allocation2 + $0x8] sm:$0xff] %vm430_vm15, %v426_v50 }
 0x45f   : > { %v433_v51 = vld [vmem:[#allocation2] sm:$0xff] }
 0x460   : > { %v434_v52 = vld [vmem:[#allocation2 + $0x8] sm:$0xff]  ;;  %444 = vrot.lane.b32.xlu1 %v433_v51, %s872_s7 }
 0x461   : > { %v756_v53 = vpack.i.bf16 %v434_v52, %v433_v51 }
 0x463   : > { %757 = vrot.lane.b32.xlu0 %v756_v53, %s873_s6 }
 0x464   : > { %457 = vperm.xlu1 %761, %v632_v54  }
 0x467   : > { %446 = vrot.lane.b32.xlu0 %v434_v52, %s872_s7 }
 0x4d2   : > { %v445_v61 = vpop.permute.xlu1 %444 }
 0x4d5   : > { %v758_v55 = vpop.permute.xlu0 %757 }
 0x4d6   : > { %v760_v56 = vunpack.i.h.bf16 %v758_v55  ;;  %v759_v57 = vunpack.i.l.bf16 %v758_v55 }
 0x4d8   : > { %v442_v58 = vsel %vm441_vm0, %v759_v57, %v760_v56 }
 0x4d9   : > { %v684_v59 = vpack.c.bf16 %v442_v58, %v433_v51  ;;  %v447_v60 = vpop.permute.xlu0 %446 }
 0x4da   : > { %v449_v63 = vsel %vm448_vm1, %v445_v61, %v447_v60 }
 0x4db   : > { %685 = vmatpush3.bf16.msra.mxu0 %v684_v59 }
 0x4dc   : > { %672 = vmatprep.subr.mxu0 %v861_v0 }
 0x4df   : > { %673 = vmatpush3.msra.mxu0 %v449_v63 }
 0x4e0   : > { %675 = vmatmul.mubr.msk.f32.vlgmr.msra.gmra.mrb[2].mxu0 %vm229_vm6, %v631_v62 }
 0x4e3   : > { %v458_v1 = vpop.permute.xlu1 %457 }
 0x5b3   : > { %v529_v2 = vpop.f32.mrb[2].mxu0 }
 0x5b4   : > { %v530_v3 = vadd.f32 %v529_v2, %v458_v1  ;;  %v676_v4 = vpop.f32.mrb[3].mxu0 }
 0x5b6   : > { %v533_v0 = vsel %vm189_vm7, %v530_v3, 0.0 }
 0x5b7   : > { %534 = vst [vmem:[%s185_s11] sm:$0xff] %v533_v0 }
 0x5b8   : > { %805 = shalt.err (!%p802_p4)
}
 0x5b9   : > { %s806_s29 = scalar_lea.hbm %s1059_s22, 128  ;;  %s810_s4 = scalar_lea.hbm %s1108_s3, 256 }
 0x5ba   : > { %p807_p5 = scmp.ne.s32.totalorder %s1059_s22, %s806_s29  ;;  %p811_p0 = scmp.lt.u32.totalorder %s1059_s22, %s1108_s3 }
 0x5bb   : > { %p812_p1 = scmp.lt.u32.totalorder %s810_s4, %s806_s29  ;;  %p814_p6 = scmp.lt.u32.totalorder %s806_s29, %s1059_s22 }
 0x5bc   : > { %p808_p8 = pnand %p807_p5, %p1117_p11 }
 0x5bd   : > { %p813_p3 = por %p812_p1, %p811_p0 }
 0x5be   : > { %p809_p9 = pneg %p808_p8 }
 0x5bf   : > { %p815_p12 = por %p814_p6, %p813_p3 }
 0x5c1   : > { %p816_p13 = pnand %p815_p12, %p809_p9 }
 0x5c3   : > { %819 = shalt.err (!%p816_p13)
}
 0x5c4   : > { %688 = dma.vmem_to_hbm [thread:$0]  (%p1117_p11), %s1061_s17, 128, %s1059_s22, %s536_s16  }
 0x5c5 PF: > { %s561_s8 = sand.u32 1, %s846_s12   ;;  %p1118_p7 = scmp.ne.s32.totalorder %s1113_s25, 0 }
 0x5c6   : > { %p1119_p10 = scmp.ge.s32.totalorder %s858_s15, 2  ;;  %s562_s9 = scalar_lea.sflag [#allocation5], %s561_s8 }
 0x5c8   : > { %p695_p2 = pnand %p1119_p10, %p1118_p7 }
 0x5ca   : > { %841 = dma.done.wait (!%p695_p2), %s562_s9, 128  }
 0x5cb   : > { %843 = vsyncadd (!%p695_p2), %s562_s9, 4294967168  ;;  %p16_p4 = scmp.ge.s32.totalorder %s920_s18, 4   ;;  %s1120_s12 = smov %s850_s13 }
 0x5cc   : > { %s1121_s13 = smov %s854_s14  ;;  %s1122_s14 = smov %s932_s21 }
 0x5cd   : > { %s1123_s15 = smov %s920_s18  ;;  %18 = sbr.rel (!%p16_p4) target bundleno = 5 (0x5), region = 81 }
 0x5d4   :  { %567 = vsyncpa [#allocation4], 1 }
 0x5d5   :  { %569 = vsyncpa [#allocation4 + $0x1], 1 }
 0x5d6   :  { %570 = vsyncpa [#allocation5], 1 }
 0x5d7   :  { %572 = vsyncpa [#allocation5 + $0x1], 1 }

</bundles_post_ra>
